<compile_context>
chip_gen: v7x
topology: tpu7x:2x2x1
jax: 0.10.0
libtpu: 0.0.40
codegen_flags: <defaults>
</compile_context>

<pallas_src>
import functools

import jax
import jax.numpy as jnp
from jax import lax
from jax.experimental import pallas as pl
from jax.experimental.pallas import tpu as pltpu


_NEG_INIT = float(jnp.finfo(jnp.float32).min)   # f32-safe "-inf" for masking
_ENC_TILE_BYTES = 6 * 1024 * 1024               # per-buffer enc tile budget (v7x-safe)
_VMEM_LIMIT_BYTES = 56 * 1024 * 1024            # > default scoped limit, < v7x physical


def _round_up(x, m):
    return (x + m - 1) // m * m


# ---------------------------------------------------------------------------
# Shared online-softmax update over one (bb, tt) energy tile.
# ---------------------------------------------------------------------------
def _init_state(ctx_ref, m_ref, l_ref):
    @pl.when(pl.program_id(1) == 0)
    def _():
        ctx_ref[...] = jnp.zeros(ctx_ref.shape, ctx_ref.dtype)
        m_ref[...] = jnp.full(m_ref.shape, _NEG_INIT, m_ref.dtype)
        l_ref[...] = jnp.zeros(l_ref.shape, l_ref.dtype)


def _online_update(energy, enc, ctx_ref, e_ref, m_ref, l_ref, *, t_valid, ragged):
    """energy: (bb, tt) f32; enc: (bb, tt, N) f32 (tail of last tile may be stale)."""
    t = pl.program_id(1)
    nt = pl.num_programs(1)
    tt = energy.shape[1]

    if ragged:
        # Last T tile overhangs the real T: mask energy (-> exp == 0 exactly)
        # and zero the stale enc tail so 0 * NaN never reaches the ctx sum.
        col = t * tt + lax.broadcasted_iota(jnp.int32, energy.shape, 1)
        valid = col < t_valid
        energy = jnp.where(valid, energy, _NEG_INIT)
        enc = jnp.where(valid[:, :, None], enc, 0.0)

    m_old = m_ref[...]                                              # (bb, 1)
    m_new = jnp.maximum(m_old, jnp.max(energy, axis=-1, keepdims=True))
    p = jnp.exp(energy - m_new)                                     # (bb, tt)
    scale = jnp.exp(m_old - m_new)                                  # (bb, 1)
    l_ref[...] = scale * l_ref[...] + jnp.sum(p, axis=-1, keepdims=True)
    # ctx[b, n] += sum_t p[b, t] * enc[b, t, n] : per-row M=1 matvec -> VPU
    # multiply + sublane (XLU) reduce instead of wasting the MXU.
    ctx_ref[...] = scale * ctx_ref[...] + jnp.sum(p[:, :, None] * enc, axis=1)
    m_ref[...] = m_new
    e_ref[...] = energy                                             # stream raw energies out

    @pl.when(t == nt - 1)
    def _():
        # Exact normalization; a divide over a (bb, 1) tensor is essentially free.
        ctx_ref[...] = ctx_ref[...] * (1.0 / l_ref[...])


# ---------------------------------------------------------------------------
# Kernels (one per attention method).  Args: inputs..., outputs..., scratch...
# ---------------------------------------------------------------------------
def _dot_kernel(h_ref, enc_ref, ctx_ref, e_ref, m_ref, l_ref, *, t_valid, ragged):
    _init_state(ctx_ref, m_ref, l_ref)
    enc = enc_ref[...]                                   # (bb, tt, N)
    h = h_ref[...]                                       # (bb, N)
    # energy[b, t] = enc[b, t, :] . h[b, :]   (VPU mul + lane/XLU reduce)
    energy = jnp.sum(enc * h[:, None, :], axis=-1)       # (bb, tt)
    _online_update(energy, enc, ctx_ref, e_ref, m_ref, l_ref,
                   t_valid=t_valid, ragged=ragged)


def _general_kernel(h_ref, enc_ref, w_ref, ctx_ref, e_ref, m_ref, l_ref, hw_ref,
                    *, t_valid, ragged):
    _init_state(ctx_ref, m_ref, l_ref)

    @pl.when(pl.program_id(1) == 0)
    def _():
        # T-invariant: (bb, N) @ (N, N) MXU matmul, hoisted out of the T loop.
        # energy[b,t] = (enc[b,t] @ W^T) . h[b] == enc[b,t] . (h[b] @ W)
        hw_ref[...] = jnp.dot(h_ref[...], w_ref[...],
                              preferred_element_type=jnp.float32)

    enc = enc_ref[...]                                   # (bb, tt, N)
    energy = jnp.sum(enc * hw_ref[...][:, None, :], axis=-1)        # (bb, tt)
    _online_update(energy, enc, ctx_ref, e_ref, m_ref, l_ref,
                   t_valid=t_valid, ragged=ragged)


def _concat_kernel(h_ref, enc_ref, w1a_ref, w1b_ref, w2_ref,
                   ctx_ref, e_ref, m_ref, l_ref, ph_ref, *, t_valid, ragged):
    _init_state(ctx_ref, m_ref, l_ref)

    @pl.when(pl.program_id(1) == 0)
    def _():
        # T-invariant half of the concat projection: h @ W1a^T (MXU, once per block).
        ph_ref[...] = lax.dot_general(h_ref[...], w1a_ref[...],
                                      (((1,), (1,)), ((), ())),
                                      preferred_element_type=jnp.float32)

    enc = enc_ref[...]                                   # (bb, tt, N)
    bb, tt, n = enc.shape
    # enc @ W1b^T with B folded into M: one 2-D MXU matmul per T tile
    # (temporaries are per-tile sized only; no full-(B,T,N) buffers).
    pe = lax.dot_general(enc.reshape(bb * tt, n), w1b_ref[...],
                         (((1,), (1,)), ((), ())),
                         preferred_element_type=jnp.float32)        # (bb*tt, N)
    # TODO(synk): run this tanh in bf16 on v6e/v7x (2x EUP throughput); v5e EUP is f32-only.
    th = jnp.tanh(pe.reshape(bb, tt, n) + ph_ref[...][:, None, :])  # (bb, tt, N)
    energy = jnp.sum(th * w2_ref[...], axis=-1)                     # (bb, tt)
    _online_update(energy, enc, ctx_ref, e_ref, m_ref, l_ref,
                   t_valid=t_valid, ragged=ragged)


# ---------------------------------------------------------------------------
# Wrapper
# ---------------------------------------------------------------------------
def attention_forward(method, hidden, encoder_outputs, params,
                      block_b=128, block_t=512):
    """Forward pass of the seq2seq Attention module.

    hidden: (B, N), encoder_outputs: (B, T, N)
    Returns (weighted_context (B, N), alpha (B, T)).
    """
    B, T, N = encoder_outputs.shape
    dt = hidden.dtype
    itemsize = jnp.dtype(encoder_outputs.dtype).itemsize

    # ---- tile selection -----------------------------------------------------
    # Batch block: multiple of 8; keep >= 2 steps on the parallel batch axis
    # when B is large enough (v7x has 2 TensorCores to shard over).
    if B <= 8:
        bb = B
    else:
        bb = min(block_b, max(8, _round_up(pl.cdiv(B, 2), 8)))

    # T tile: multiple of 8; keep the f32 (bb, tt, N) enc tile under the
    # per-buffer budget so double-buffering (+ concat temporaries) fits the
    # smallest VMEM (v7x: 64 MiB physical).
    t8 = _round_up(T, 8)
    if t8 <= block_t and bb * t8 * N * itemsize <= _ENC_TILE_BYTES:
        tt = t8                                          # single T step
    else:
        # >1 T step: tt must also be a multiple of 128 (lane rule for the
        # per-tile energy output block); shrink bb before giving up on budget.
        tt = (min(block_t, _ENC_TILE_BYTES // (bb * N * itemsize)) // 128) * 128
        tt = max(tt, 128)
        while bb > 8 and bb * tt * N * itemsize > _ENC_TILE_BYTES:
            bb = max(8, bb // 2)
    nb = pl.cdiv(B, bb)
    nt = pl.cdiv(T, tt)
    t_pad = nt * tt
    ragged = (t_pad != T)                                # last T tile overhangs -> mask in-kernel
    grid = (nb, nt)

    h_spec = pl.BlockSpec((bb, N), lambda b, t: (b, 0))
    enc_spec = pl.BlockSpec((bb, tt, N), lambda b, t: (b, t, 0))
    ctx_spec = pl.BlockSpec((bb, N), lambda b, t: (b, 0))    # resident accumulator over t
    e_spec = pl.BlockSpec((bb, tt), lambda b, t: (b, t))     # streamed out per T tile
    m_spec = pl.BlockSpec((bb, 1), lambda b, t: (b, 0))      # resident running max
    l_spec = pl.BlockSpec((bb, 1), lambda b, t: (b, 0))      # resident running denom

    out_specs = (ctx_spec, e_spec, m_spec, l_spec)
    out_shape = (jax.ShapeDtypeStruct((B, N), jnp.float32),      # weighted context (f32 accum)
                 jax.ShapeDtypeStruct((B, t_pad), jnp.float32),  # raw energies
                 jax.ShapeDtypeStruct((B, 1), jnp.float32),      # softmax running max
                 jax.ShapeDtypeStruct((B, 1), jnp.float32))      # softmax denom

    common = dict(t_valid=T, ragged=ragged)

    if method == 'dot':
        kernel = functools.partial(_dot_kernel, **common)
        in_specs = [h_spec, enc_spec]
        scratch = []
        args = (hidden, encoder_outputs)
    elif method == 'general':
        kernel = functools.partial(_general_kernel, **common)
        in_specs = [h_spec, enc_spec, pl.BlockSpec((N, N), lambda b, t: (0, 0))]
        scratch = [pltpu.VMEM((bb, N), jnp.float32)]             # hoisted h @ W
        args = (hidden, encoder_outputs, params['attn_w'])
    elif method == 'concat':
        # Pre-split the (N, 2N) concat weight in the wrapper: an in-kernel lane
        # slice at column N (usually not a 128 boundary) would force a VMEM copy.
        w1a = params['attn_w'][:, :N]
        w1b = params['attn_w'][:, N:]
        kernel = functools.partial(_concat_kernel, **common)
        in_specs = [h_spec, enc_spec,
                    pl.BlockSpec((N, N), lambda b, t: (0, 0)),
                    pl.BlockSpec((N, N), lambda b, t: (0, 0)),
                    pl.BlockSpec((1, N), lambda b, t: (0, 0))]
        scratch = [pltpu.VMEM((bb, N), jnp.float32)]             # hoisted h @ W1a^T
        args = (hidden, encoder_outputs, w1a, w1b, params['attn_lin_w'])
    else:
        raise ValueError(method)

    ctx, energy, m, l = pl.pallas_call(
        kernel,
        grid=grid,
        in_specs=in_specs,
        out_specs=out_specs,
        out_shape=out_shape,
        scratch_shapes=scratch,
        compiler_params=pltpu.CompilerParams(
            dimension_semantics=("parallel", "arbitrary"),
            vmem_limit_bytes=_VMEM_LIMIT_BYTES),
    )(*args)

    # Tiny XLA epilogue over a (B, T)-sized array: exact softmax weights from
    # the streamed raw energies and the kernel's (max, denom).
    alpha = jnp.exp(energy[:, :T] - m) / l
    return ctx.astype(dt), alpha.astype(dt)


# ---------------------------------------------------------------------------
# Pure-JAX reference (mirrors the PyTorch forward)
# ---------------------------------------------------------------------------
def attention_ref(method, hidden, enc, params):
    if method == 'dot':
        energy = jnp.einsum('btn,bn->bt', enc, hidden)
    elif method == 'general':
        proj = jnp.einsum('btn,mn->btm', enc, params['attn_w'])
        energy = jnp.einsum('btm,bm->bt', proj, hidden)
    elif method == 'concat':
        hexp = jnp.broadcast_to(hidden[:, None, :], enc.shape)
        cat = jnp.concatenate([hexp, enc], axis=2)
        proj = jnp.tanh(jnp.einsum('btk,mk->btm', cat, params['attn_w']))
        energy = jnp.einsum('btm,om->bto', proj, params['attn_lin_w'])[..., 0]
    else:
        raise ValueError(method)
    alpha = jax.nn.softmax(energy, axis=-1)
    ctx = jnp.einsum('bt,btn->bn', alpha, enc)
    return ctx, alpha


# ---------------------------------------------------------------------------
if __name__ == "__main__":
    ok = True
    # (B, T, N): toy size from the module spec + a larger ragged multi-tile
    # case that exercises T tiling, the stale-tail masking and batch overhang.
    for B, T, N in ((2, 8, 32), (12, 700, 128)):
        key = jax.random.PRNGKey(0)
        k_h, k_e, k_w, k_w1, k_w2 = jax.random.split(key, 5)

        hidden = jax.random.normal(k_h, (B, N), dtype=jnp.float32)
        encoder_outputs = jax.random.normal(k_e, (B, T, N), dtype=jnp.float32)

        params_general = {
            # nn.Linear(hidden_size, hidden_size, bias=False)   -> (N, N)
            'attn_w': jax.random.normal(k_w, (N, N), dtype=jnp.float32) * 0.1,
        }
        params_concat = {
            # nn.Linear(hidden_size*2, hidden_size, bias=False) -> (N, 2N)
            'attn_w': jax.random.normal(k_w1, (N, 2 * N), dtype=jnp.float32) * 0.1,
            # nn.Linear(hidden_size, 1, bias=False)             -> (1, N)
            'attn_lin_w': jax.random.normal(k_w2, (1, N), dtype=jnp.float32) * 0.1,
        }

        for method, p in (('dot', {}), ('general', params_general),
                          ('concat', params_concat)):
            ctx, alpha = attention_forward(method, hidden, encoder_outputs, p)
            jax.block_until_ready((ctx, alpha))
            ctx_r, alpha_r = attention_ref(method, hidden, encoder_outputs, p)
            ok &= bool(jnp.allclose(ctx, ctx_r, atol=2e-4, rtol=2e-4))
            ok &= bool(jnp.allclose(alpha, alpha_r, atol=2e-4, rtol=2e-4))
            ok &= (ctx.shape == (B, N)) and (alpha.shape == (B, T))

    print("KERNEL_OK" if ok else "MISMATCH")
</pallas_src>

<mosaic_0001>
module attributes {stable_mosaic.version = 11 : i64} {
  func.func @_dot_kernel(%arg0: i32, %arg1: i32, %arg2: memref<2x32xf32, #tpu.memory_space<vmem>>, %arg3: memref<2x8x32xf32, #tpu.memory_space<vmem>>, %arg4: memref<2x32xf32, #tpu.memory_space<vmem>>, %arg5: memref<2x8xf32, #tpu.memory_space<vmem>>, %arg6: memref<2x1xf32, #tpu.memory_space<vmem>>, %arg7: memref<2x1xf32, #tpu.memory_space<vmem>>) attributes {dimension_semantics = [#tpu.dimension_semantics<parallel>, #tpu.dimension_semantics<arbitrary>], iteration_bounds = array<i64: 1, 1>, scalar_prefetch = 0 : i64, scratch_operands = 0 : i64, tpu.core_type = #tpu.core_type<tc>, window_params = [{transform_indices = @transform_0, window_bounds = array<i64: 2, 32>}, {transform_indices = @transform_1, window_bounds = array<i64: 2, 8, 32>}, {transform_indices = @transform_2, window_bounds = array<i64: 2, 32>}, {transform_indices = @transform_3, window_bounds = array<i64: 2, 8>}, {transform_indices = @transform_4, window_bounds = array<i64: 2, 1>}, {transform_indices = @transform_5, window_bounds = array<i64: 2, 1>}]} {
    %c0_i32 = arith.constant 0 : i32
    %0 = arith.cmpi eq, %arg1, %c0_i32 : i32
    %1 = arith.extui %0 : i1 to i32
    %c0_i32_0 = arith.constant 0 : i32
    %2 = arith.cmpi ne, %1, %c0_i32_0 : i32
    scf.if %2 {
      %cst_24 = arith.constant 0.000000e+00 : f32
      %38 = vector.broadcast %cst_24 : f32 to vector<2x32xf32>
      %c0_25 = arith.constant 0 : index
      %c0_26 = arith.constant 0 : index
      %39 = vector.load %arg4[%c0_25, %c0_26] : memref<2x32xf32, #tpu.memory_space<vmem>>, vector<2x32xf32>
      tpu.vector_store %arg4[%c0_25, %c0_26], %38 {strides = array<i32>} : memref<2x32xf32, #tpu.memory_space<vmem>>, vector<2x32xf32>,
      %cst_27 = arith.constant -3.40282347E+38 : f32
      %40 = vector.broadcast %cst_27 : f32 to vector<2x1xf32>
      %c0_28 = arith.constant 0 : index
      %c0_29 = arith.constant 0 : index
      %41 = vector.load %arg6[%c0_28, %c0_29] : memref<2x1xf32, #tpu.memory_space<vmem>>, vector<2x1xf32>
      tpu.vector_store %arg6[%c0_28, %c0_29], %40 {strides = array<i32>} : memref<2x1xf32, #tpu.memory_space<vmem>>, vector<2x1xf32>,
      %cst_30 = arith.constant 0.000000e+00 : f32
      %42 = vector.broadcast %cst_30 : f32 to vector<2x1xf32>
      %c0_31 = arith.constant 0 : index
      %c0_32 = arith.constant 0 : index
      %43 = vector.load %arg7[%c0_31, %c0_32] : memref<2x1xf32, #tpu.memory_space<vmem>>, vector<2x1xf32>
      tpu.vector_store %arg7[%c0_31, %c0_32], %42 {strides = array<i32>} : memref<2x1xf32, #tpu.memory_space<vmem>>, vector<2x1xf32>,
    } else {
    }
    %c0 = arith.constant 0 : index
    %c0_1 = arith.constant 0 : index
    %c0_2 = arith.constant 0 : index
    %3 = vector.load %arg3[%c0, %c0_1, %c0_2] : memref<2x8x32xf32, #tpu.memory_space<vmem>>, vector<2x8x32xf32>
    %c0_3 = arith.constant 0 : index
    %c0_4 = arith.constant 0 : index
    %4 = vector.load %arg2[%c0_3, %c0_4] : memref<2x32xf32, #tpu.memory_space<vmem>>, vector<2x32xf32>
    %5 = vector.shape_cast %4 : vector<2x32xf32> to vector<2x1x32xf32>
    %6 = vector.broadcast %5 : vector<2x1x32xf32> to vector<2x8x32xf32>
    %7 = arith.mulf %3, %6 : vector<2x8x32xf32>
    %cst = arith.constant dense<0.000000e+00> : vector<2x8xf32>
    %8 = vector.multi_reduction <add>, %7, %cst [2] : vector<2x8x32xf32> to vector<2x8xf32>
    %c0_5 = arith.constant 0 : index
    %c0_6 = arith.constant 0 : index
    %9 = vector.load %arg6[%c0_5, %c0_6] : memref<2x1xf32, #tpu.memory_space<vmem>>, vector<2x1xf32>
    %cst_7 = arith.constant dense<0xFF800000> : vector<2xf32>
    %10 = vector.multi_reduction <maximumf>, %8, %cst_7 [1] : vector<2x8xf32> to vector<2xf32>
    %11 = vector.shape_cast %10 : vector<2xf32> to vector<2x1xf32>
    %12 = arith.maximumf %9, %11 : vector<2x1xf32>
    %13 = vector.broadcast %12 : vector<2x1xf32> to vector<2x8xf32>
    %14 = arith.subf %8, %13 : vector<2x8xf32>
    %15 = math.exp %14 : vector<2x8xf32>
    %16 = arith.subf %9, %12 : vector<2x1xf32>
    %17 = math.exp %16 : vector<2x1xf32>
    %c0_8 = arith.constant 0 : index
    %c0_9 = arith.constant 0 : index
    %18 = vector.load %arg7[%c0_8, %c0_9] : memref<2x1xf32, #tpu.memory_space<vmem>>, vector<2x1xf32>
    %19 = arith.mulf %17, %18 : vector<2x1xf32>
    %cst_10 = arith.constant dense<0.000000e+00> : vector<2xf32>
    %20 = vector.multi_reduction <add>, %15, %cst_10 [1] : vector<2x8xf32> to vector<2xf32>
    %21 = vector.shape_cast %20 : vector<2xf32> to vector<2x1xf32>
    %22 = arith.addf %19, %21 : vector<2x1xf32>
    %c0_11 = arith.constant 0 : index
    %c0_12 = arith.constant 0 : index
    %23 = vector.load %arg7[%c0_11, %c0_12] : memref<2x1xf32, #tpu.memory_space<vmem>>, vector<2x1xf32>
    tpu.vector_store %arg7[%c0_11, %c0_12], %22 {strides = array<i32>} : memref<2x1xf32, #tpu.memory_space<vmem>>, vector<2x1xf32>,
    %c0_13 = arith.constant 0 : index
    %c0_14 = arith.constant 0 : index
    %24 = vector.load %arg4[%c0_13, %c0_14] : memref<2x32xf32, #tpu.memory_space<vmem>>, vector<2x32xf32>
    %25 = vector.broadcast %17 : vector<2x1xf32> to vector<2x32xf32>
    %26 = arith.mulf %25, %24 : vector<2x32xf32>
    %27 = vector.shape_cast %15 : vector<2x8xf32> to vector<2x8x1xf32>
    %28 = vector.broadcast %27 : vector<2x8x1xf32> to vector<2x8x32xf32>
    %29 = arith.mulf %28, %3 : vector<2x8x32xf32>
    %cst_15 = arith.constant dense<0.000000e+00> : vector<2x32xf32>
    %30 = vector.multi_reduction <add>, %29, %cst_15 [1] : vector<2x8x32xf32> to vector<2x32xf32>
    %31 = arith.addf %26, %30 : vector<2x32xf32>
    %c0_16 = arith.constant 0 : index
    %c0_17 = arith.constant 0 : index
    %32 = vector.load %arg4[%c0_16, %c0_17] : memref<2x32xf32, #tpu.memory_space<vmem>>, vector<2x32xf32>
    tpu.vector_store %arg4[%c0_16, %c0_17], %31 {strides = array<i32>} : memref<2x32xf32, #tpu.memory_space<vmem>>, vector<2x32xf32>,
    %c0_18 = arith.constant 0 : index
    %c0_19 = arith.constant 0 : index
    %33 = vector.load %arg6[%c0_18, %c0_19] : memref<2x1xf32, #tpu.memory_space<vmem>>, vector<2x1xf32>
    tpu.vector_store %arg6[%c0_18, %c0_19], %12 {strides = array<i32>} : memref<2x1xf32, #tpu.memory_space<vmem>>, vector<2x1xf32>,
    %c0_20 = arith.constant 0 : index
    %c0_21 = arith.constant 0 : index
    %34 = vector.load %arg5[%c0_20, %c0_21] : memref<2x8xf32, #tpu.memory_space<vmem>>, vector<2x8xf32>
    tpu.vector_store %arg5[%c0_20, %c0_21], %8 {strides = array<i32>} : memref<2x8xf32, #tpu.memory_space<vmem>>, vector<2x8xf32>,
    %c0_i32_22 = arith.constant 0 : i32
    %35 = arith.cmpi eq, %arg1, %c0_i32_22 : i32
    %36 = arith.extui %35 : i1 to i32
    %c0_i32_23 = arith.constant 0 : i32
    %37 = arith.cmpi ne, %36, %c0_i32_23 : i32
    scf.if %37 {
      %c0_24 = arith.constant 0 : index
      %c0_25 = arith.constant 0 : index
      %38 = vector.load %arg4[%c0_24, %c0_25] : memref<2x32xf32, #tpu.memory_space<vmem>>, vector<2x32xf32>
      %c0_26 = arith.constant 0 : index
      %c0_27 = arith.constant 0 : index
      %39 = vector.load %arg7[%c0_26, %c0_27] : memref<2x1xf32, #tpu.memory_space<vmem>>, vector<2x1xf32>
      %cst_28 = arith.constant 1.000000e+00 : f32
      %40 = vector.broadcast %cst_28 : f32 to vector<2x1xf32>
      %41 = arith.divf %40, %39 : vector<2x1xf32>
      %42 = vector.broadcast %41 : vector<2x1xf32> to vector<2x32xf32>
      %43 = arith.mulf %38, %42 : vector<2x32xf32>
      %c0_29 = arith.constant 0 : index
      %c0_30 = arith.constant 0 : index
      %44 = vector.load %arg4[%c0_29, %c0_30] : memref<2x32xf32, #tpu.memory_space<vmem>>, vector<2x32xf32>
      tpu.vector_store %arg4[%c0_29, %c0_30], %43 {strides = array<i32>} : memref<2x32xf32, #tpu.memory_space<vmem>>, vector<2x32xf32>,
    } else {
    }
    return
  }
  func.func @transform_0(%arg0: i32, %arg1: i32) -> (i32, i32) {
    %c0_i32 = arith.constant 0 : i32
    %c0_i32_0 = arith.constant 0 : i32
    return %arg0, %c0_i32 : i32, i32
  }
  func.func @transform_1(%arg0: i32, %arg1: i32) -> (i32, i32, i32) {
    %c0_i32 = arith.constant 0 : i32
    %c0_i32_0 = arith.constant 0 : i32
    return %arg0, %arg1, %c0_i32 : i32, i32, i32
  }
  func.func @transform_2(%arg0: i32, %arg1: i32) -> (i32, i32) {
    %c0_i32 = arith.constant 0 : i32
    %c0_i32_0 = arith.constant 0 : i32
    return %arg0, %c0_i32 : i32, i32
  }
  func.func @transform_3(%arg0: i32, %arg1: i32) -> (i32, i32) {
    %c0_i32 = arith.constant 0 : i32
    return %arg0, %arg1 : i32, i32
  }
  func.func @transform_4(%arg0: i32, %arg1: i32) -> (i32, i32) {
    %c0_i32 = arith.constant 0 : i32
    %c0_i32_0 = arith.constant 0 : i32
    return %arg0, %c0_i32 : i32, i32
  }
  func.func @transform_5(%arg0: i32, %arg1: i32) -> (i32, i32) {
    %c0_i32 = arith.constant 0 : i32
    %c0_i32_0 = arith.constant 0 : i32
    return %arg0, %c0_i32 : i32, i32
  }
}

</mosaic_0001>

<bundles_post_ra>
// kernel: tpu_custom_call.1
= control target key start
LH: loop header
LB: loop body
LE: loop exit
PB: predicated region body
PF: predicated region fallthrough
CT: control target
= control target key end

     0   :  { %11 = vsyncpa [#allocation3], 0  ;;  %s503_s0 = inlined_call_operand.hbm [shape: f32[2,32], index: 0, kind: input, shape index: {}]   ;;  %s504_s1 = inlined_call_operand.hbm [shape: f32[2,8,32], index: 1, kind: input, shape index: {}]   ;;  %s505_s2 = inlined_call_operand.hbm [shape: f32[2,32], index: 2, kind: output, shape index: {0}]   ;;  %s506_s3 = inlined_call_operand.hbm [shape: f32[2,8], index: 3, kind: output, shape index: {1}]   ;;  %s507_s4 = inlined_call_operand.vmem [shape: f32[2,1], index: 4, kind: output, shape index: {2}]   ;;  %s508_s5 = inlined_call_operand.vmem [shape: f32[2,1], index: 5, kind: output, shape index: {3}]  }
   0x1   :  { %12 = vsyncpa [#allocation6], 0 }
   0x2   :  { %13 = vsyncpa [#allocation4], 0 }
   0x3   :  { %14 = vsyncpa [#allocation9], 0  ;;  %s370_s18 = smov [#allocation2]   ;;  %s371_s20 = smov [#allocation5]  }
   0x4   :  { %s21_s19 = sshll.u32 %s370_s18, 4  ;;  %s30_s21 = sshll.u32 %s371_s20, 4  ;;  %s22_s19 = int_to_ptr.vmem [resolvable:$true] %s21_s19  ;;  %s410_s21 = int_to_ptr.vmem [resolvable:$true] %s30_s21 }
   0x5   :  { %s274_s24 = scalar_lea.hbm %s503_s0, 32 }
   0x6   :  { %p275_p0 = scmp.ne.s32.totalorder %s503_s0, %s274_s24  ;;  %p278_p1 = scmp.lt.u32.totalorder %s274_s24, %s503_s0 }
   0x8   :  { %p280_p2 = pnand %p278_p1, %p275_p0 }
   0xa   :  { %283 = shalt.err (!%p280_p2)
}
   0xb   :  { %s284_s29 = scalar_lea.vmem %s22_s19, 32  ;;  %p289_p4 = scmp.lt.s32.totalorder %s22_s19, %s22_s19 }
   0xc   :  { %p285_p3 = scmp.ne.s32.totalorder %s22_s19, %s284_s29  ;;  %p290_p5 = scmp.lt.s32.totalorder %s284_s29, %s284_s29 }
   0xe   :  { %p291_p6 = por %p290_p5, %p289_p4 }
  0x10   :  { %p292_p7 = pnand %p291_p6, %p285_p3 }
  0x12   :  { %295 = shalt.err (!%p292_p7)
}
  0x13   :  { %24 = dma.hbm_to_vmem [thread:$0]  %s503_s0, 32, %s22_s19, [#allocation3]  }
  0x14   :  { %s296_s9 = scalar_lea.hbm %s504_s1, 256 }
  0x15   :  { %p297_p8 = scmp.ne.s32.totalorder %s504_s1, %s296_s9  ;;  %p300_p9 = scmp.lt.u32.totalorder %s296_s9, %s504_s1 }
  0x17   :  { %p302_p10 = pnand %p300_p9, %p297_p8 }
  0x19   :  { %305 = shalt.err (!%p302_p10)
}
  0x1a   :  { %s306_s14 = scalar_lea.vmem %s410_s21, 256  ;;  %p311_p12 = scmp.lt.s32.totalorder %s410_s21, %s410_s21 }
  0x1b   :  { %p307_p11 = scmp.ne.s32.totalorder %s410_s21, %s306_s14  ;;  %p312_p13 = scmp.lt.s32.totalorder %s306_s14, %s306_s14 }
  0x1d   :  { %p313_p0 = por %p312_p13, %p311_p12 }
  0x1f   :  { %p314_p1 = pnand %p313_p0, %p307_p11 }
  0x21   :  { %317 = shalt.err (!%p314_p1)
}
  0x22   :  { %s372_s0 = smov 128   ;;  %s373_s15 = smov 8  }
  0x23   :  { %36 = dma.hbm_to_vmem [thread:$0]  %s504_s1, 256, %s410_s21, [#allocation6], %s372_s0, %s372_s0, %s373_s15  }
  0x24   :  { %362 = dma.done.wait [#allocation3], 32  }
  0x25   :  { %363 = vsyncadd [#allocation3], 4294967264 }
  0x26   :  { %364 = dma.done.wait [#allocation6], 256  }
  0x27   :  { %365 = vsyncadd [#allocation6], 4294967040  ;;  %v67_v0 = vlaneseq  ;;  %v374_v1 = vmov 1966171168   ;;  %v52_v10 = vld [vmem:[#allocation5] sm:$0xff]  ;;  %vm90_vm0 = vcmask 261120  }
  0x28   :  { %v65_v2 = vunpack.c.l.s4 %v374_v1  ;;  %v253_v7 = vld.sshfl [vmem:[#allocation2] sm:$0x11 pattern:$0x75316420]  ;;  %v53_v13 = vld [vmem:[#allocation5 + $0x8] sm:$0xff]  ;;  %vm49_vm1 = vcmask 1024  }
  0x29   :  { %v68_v3 = vshrl.u32 %v67_v0, 7  ;;  %v63_v8 = vcombine.high %v253_v7, %v253_v7  ;;  %v375_v19 = vmov -3.4028235e+38   ;;  %v101_v20 = vand.u32 127, %v67_v0  ;;  %s378_s30 = smov [#allocation8]  }
  0x2a   :  { %v66_v4 = vunpack.c.0.s8 %v65_v2  ;;  %50 = vst.msk [vmem:[%s507_s4] sm:$0x3] %vm49_vm1, %v375_v19  ;;  %vm110_vm2 = vcmask 1041409   ;;  %vm113_vm3 = vcmask 58368   ;;  %v376_v28 = vmov 0   ;;  %s231_s6 = sshll.u32 %s378_s30, 4  ;;  %s232_s6 = int_to_ptr.vmem [resolvable:$true] %s231_s6 }
  0x2b   :  { %v80_v6 = vsub.s32 0, %v68_v3  ;;  %v104_v22 = vsub.s32 %v101_v20, %v68_v3  ;;  %264 = vset.pattern.permute.xlu1 %v376_v28  ;;  %265 = vset.pattern.permute.xlu0 %v376_v28  ;;  %v377_v29 = vmov 0.0   ;;  %v128_v34 = vsub.s32 1, %v68_v3  ;;  %s318_s7 = scalar_lea.vmem %s232_s6, 32  ;;  %p323_p3 = scmp.lt.s32.totalorder %s232_s6, %s232_s6 }
  0x2c   :  { %v69_v5 = vsub.s32 %v66_v4, %v68_v3  ;;  %51 = vst.msk [vmem:[%s508_s5] sm:$0x3] %vm49_vm1, %v377_v29  ;;  %vm47_vm4 = vcmask 254976   ;;  %p319_p2 = scmp.ne.s32.totalorder %s232_s6, %s318_s7  ;;  %p324_p4 = scmp.lt.s32.totalorder %s318_s7, %s318_s7 }
  0x2d   :  { %48 = vst.msk [vmem:[#allocation7] sm:$0x3] %vm47_vm4, %v377_v29 }
  0x2e   :  { %v70_v9 = vrot.slane %v253_v7, %v69_v5  ;;  %v77_v12 = vrot.slane %v63_v8, %v69_v5  ;;  %p325_p5 = por %p324_p4, %p323_p3 }
  0x30   :  { %v81_v11 = vrot.slane %v70_v9, %v80_v6  ;;  %v85_v15 = vrot.slane %v77_v12, %v80_v6  ;;  %p326_p6 = pnand %p325_p5, %p319_p2 }
  0x31   :  { %v97_v30 = vld [vmem:[%s507_s4] sm:$0x3] }
  0x32   :  { %v88_v14 = vmul.f32 %v81_v11, %v52_v10  ;;  %v89_v17 = vmul.f32 %v85_v15, %v53_v13 }
  0x33   :  { %v141_v9 = vld [vmem:[%s508_s5] sm:$0x3] }
  0x34   :  { %v91_v16 = vsel %vm90_vm0, %v88_v14, 0.0  ;;  %v94_v18 = vsel %vm90_vm0, %v89_v17, 0.0  ;;  %v167_v3 = vld [vmem:[#allocation7] sm:$0x3] }
  0x35   :  { %92 = vadd.xlane.f32.xlu0 %v91_v16 }
  0x39   :  { %95 = vadd.xlane.f32.xlu0 %v94_v18 }
  0xc2   :  { %v93_v21 = vpop.xlane.xlu0 %92 }
  0xc3   :  { %v105_v24 = vrot.slane %v93_v21, %v104_v22 }
  0xc6   :  { %v96_v23 = vpop.xlane.xlu0 %95 }
  0xc7   :  { %v109_v25 = vrot.slane %v96_v23, %v104_v22 }
  0xc9   :  { %v111_v26 = vsel %vm110_vm2, %v109_v25, %v105_v24 }
  0xca   :  { %v114_v27 = vsel %vm113_vm3, %v111_v26, -inf  ;;  %200 = vst.msk [vmem:[#allocation8] sm:$0x3] %vm113_vm3, %v111_v26 }
  0xcb   :  { %115 = vmax.xlane.f32.xlu1 %v114_v27 }
 0x158   :  { %v116_v31 = vpop.xlane.xlu1 %115 }
 0x159   :  { %v117_v32 = vmax.f32 %v97_v30, %v116_v31 }
 0x15b   :  { %v138_v33 = vsub.f32 %v97_v30, %v117_v32  ;;  %199 = vst.msk [vmem:[%s507_s4] sm:$0x3] %vm49_vm1, %v117_v32  ;;  %120 = vperm.xlu1 %264, %v117_v32  }
 0x15d   :  { %v139_v42 = vmul.f32 1.442695, %v138_v33 }
 0x1da   :  { %v121_v35 = vpop.permute.xlu1 %120 }
 0x1db   :  { %v125_v36 = vrot.slane %v121_v35, %v80_v6  ;;  %v129_v37 = vrot.slane %v121_v35, %v128_v34 }
 0x1dd   :  { %v132_v38 = vsub.f32 %v93_v21, %v125_v36  ;;  %v133_v39 = vsub.f32 %v96_v23, %v129_v37 }
 0x1df   :  { %v134_v40 = vmul.f32 1.442695, %v132_v38  ;;  %v136_v41 = vmul.f32 1.442695, %v133_v39 }
 0x1e1   :  { %266 = vpow2.f32 %v134_v40 }
 0x1e2   :  { %268 = vpow2.f32 %v136_v41 }
 0x1e3   :  { %270 = vpow2.f32 %v139_v42 }
 0x1eb   :  { %v267_v43 = vpop.eup %266 }
 0x1ec   :  { %v269_v44 = vpop.eup %268  ;;  %146 = vperm.xlu0 %265, %v267_v43  }
 0x1ed   :  { %149 = vperm.xlu1 %264, %v269_v44   ;;  %v271_v45 = vpop.eup %270 }
 0x1f0   :  { %170 = vperm.xlu0 %265, %v271_v45  }
 0x26b   :  { %v147_v46 = vpop.permute.xlu0 %146 }
 0x26c   :  { %v150_v47 = vpop.permute.xlu1 %149  ;;  %v154_v48 = vrot.slane %v147_v46, %v104_v22  ;;  %v176_v49 = vmul.f32 %v147_v46, %v52_v10  ;;  %v142_v10 = vmul.f32 %v271_v45, %v141_v9 }
 0x26d   :  { %v158_v50 = vrot.slane %v150_v47, %v104_v22  ;;  %v177_v51 = vmul.f32 %v150_v47, %v53_v13 }
 0x26e   :  { %v178_v52 = vsel %vm90_vm0, %v176_v49, 0.0 }
 0x26f   :  { %v185_v53 = vsel %vm90_vm0, %v177_v51, 0.0  ;;  %v179_v54 = vrot.slane %v178_v52, 4  ;;  %v159_v55 = vsel %vm110_vm2, %v158_v50, %v154_v48  ;;  %v171_v2 = vpop.permute.xlu0 %170 }
 0x270   :  { %v186_v56 = vrot.slane %v185_v53, 4  ;;  %v161_v57 = vsel %vm113_vm3, %v159_v55, 0.0  ;;  %v173_v6 = vmul.f32 %v171_v2, %v167_v3 }
 0x271   :  { %v180_v58 = vadd.f32 %v179_v54, %v178_v52  ;;  %162 = vadd.xlane.f32.xlu1 %v161_v57 }
 0x272   :  { %v187_v59 = vadd.f32 %v186_v56, %v185_v53 }
 0x273   :  { %v181_v60 = vrot.slane %v180_v58, 2 }
 0x274   :  { %v188_v61 = vrot.slane %v187_v59, 2 }
 0x275   :  { %v182_v62 = vadd.f32 %v181_v60, %v180_v58 }
 0x276   :  { %v189_v63 = vadd.f32 %v188_v61, %v187_v59 }
 0x277   :  { %v183_v0 = vrot.slane %v182_v62, 1 }
 0x278   :  { %v190_v1 = vrot.slane %v189_v63, 1 }
 0x279   :  { %v184_v4 = vadd.f32 %v183_v0, %v182_v62 }
 0x27a   :  { %v191_v5 = vadd.f32 %v190_v1, %v189_v63 }
 0x27c   :  { %v194_v7 = vsel %vm110_vm2, %v191_v5, %v184_v4 }
 0x27d   :  { %v196_v8 = vadd.f32 %v194_v7, %v173_v6 }
 0x27f   :  { %198 = vst.msk [vmem:[#allocation7] sm:$0x3] %vm47_vm4, %v196_v8 }
 0x2fe   :  { %v163_v11 = vpop.xlane.xlu1 %162 }
 0x2ff   :  { %v164_v12 = vadd.f32 %v163_v11, %v142_v10 }
 0x301   :  { %166 = vst.msk [vmem:[%s508_s5] sm:$0x3] %vm49_vm1, %v164_v12 }
 0x308   :  { %v205_v13 = vld [vmem:[%s508_s5] sm:$0x3] }
 0x309   :  { %272 = vrcp.f32 %v205_v13 }
 0x313   :  { %v273_v14 = vpop.eup %272 }
 0x314   :  { %210 = vperm.xlu0 %265, %v273_v14  }
 0x315   :  { %329 = shalt.err (!%p326_p6)
}
 0x316   :  { %s330_s10 = scalar_lea.hbm %s506_s3, 32 }
 0x317   :  { %p331_p7 = scmp.ne.s32.totalorder %s506_s3, %s330_s10  ;;  %p334_p8 = scmp.lt.u32.totalorder %s330_s10, %s506_s3 }
 0x319   :  { %p336_p9 = pnand %p334_p8, %p331_p7 }
 0x31b   :  { %339 = shalt.err (!%p336_p9)
}
 0x31c   :  { %234 = dma.vmem_to_hbm [thread:$0]  %s232_s6, 32, %s506_s3, [#allocation9]   ;;  %v204_v16 = vld [vmem:[#allocation7] sm:$0x3] }
 0x31d   :  { %s379_s15 = smov [#allocation7]  }
 0x31e   :  { %s221_s16 = sshll.u32 %s379_s15, 4  ;;  %s222_s16 = int_to_ptr.vmem [resolvable:$true] %s221_s16 }
 0x31f   :  { %s340_s17 = scalar_lea.vmem %s222_s16, 32  ;;  %p345_p11 = scmp.lt.s32.totalorder %s222_s16, %s222_s16 }
 0x320   :  { %p341_p10 = scmp.ne.s32.totalorder %s222_s16, %s340_s17  ;;  %p346_p12 = scmp.lt.s32.totalorder %s340_s17, %s340_s17 }
 0x322   :  { %p347_p13 = por %p346_p12, %p345_p11 }
 0x324   :  { %p348_p0 = pnand %p347_p13, %p341_p10 }
 0x393   :  { %v211_v15 = vpop.permute.xlu0 %210 }
 0x394   :  { %v213_v17 = vmul.f32 %v211_v15, %v204_v16 }
 0x396   :  { %214 = vst.msk [vmem:[#allocation7] sm:$0x3] %vm47_vm4, %v213_v17 }
 0x397   :  { %351 = shalt.err (!%p348_p0)
}
 0x398   :  { %s352_s19 = scalar_lea.hbm %s505_s2, 32 }
 0x399   :  { %p353_p1 = scmp.ne.s32.totalorder %s505_s2, %s352_s19  ;;  %p356_p2 = scmp.lt.u32.totalorder %s352_s19, %s505_s2 }
 0x39b   :  { %p358_p3 = pnand %p356_p2, %p353_p1 }
 0x39d   :  { %361 = shalt.err (!%p358_p3)
}
 0x39e   :  { %224 = dma.vmem_to_hbm [thread:$0]  %s222_s16, 32, %s505_s2, [#allocation4]  }
 0x39f   :  { %366 = dma.done.wait [#allocation4], 32  }
 0x3a0   :  { %367 = vsyncadd [#allocation4], 4294967264 }
 0x3a1   :  { %368 = dma.done.wait [#allocation9], 32  }
 0x3a2   :  { %369 = vsyncadd [#allocation9], 4294967264 }
 0x3a3   :  { %249 = vsyncpa [#allocation3], 1 }
 0x3a4   :  { %250 = vsyncpa [#allocation6], 1 }
 0x3a5   :  { %251 = vsyncpa [#allocation4], 1 }
 0x3a6   :  { %252 = vsyncpa [#allocation9], 1 }

</bundles_post_ra>
